<compile_context>
chip_gen: v7x
topology: tpu7x:2x2x1
jax: 0.10.0
libtpu: 0.0.40
codegen_flags: <defaults>
</compile_context>

<pallas_src>
import jax
import jax.numpy as jnp
from jax.experimental import pallas as pl
from jax.experimental.pallas import tpu as pltpu

_H1, _H2, _H3 = 128, 64, 32

_SUBLANE = 16                 # bf16 sublane packing (superset of f32's 8)
_LANE = 128
_MAX_BLOCK_B = 8192           # review: 4096-8192 when VMEM allows


def _round_up(n, m):
    return (n + m - 1) // m * m


def _tpu_budget():
    """(vmem_capacity_bytes, tensorcores_per_chip) with safe fallbacks."""
    vmem = 128 << 20
    try:
        info = pltpu.get_tpu_info()
        vmem = int(getattr(info, "vmem_capacity_bytes", vmem))
    except Exception:
        pass
    cores = 0
    try:
        cores = int(getattr(jax.devices()[0], "num_cores", 0))
    except Exception:
        cores = 0
    if not cores:
        # v7x exposes ~64 MiB VMEM per TensorCore and has 2 TCs per chip;
        # v5e/v6e have 128 MiB and a single TC.
        cores = 2 if vmem <= (64 << 20) else 1
    return vmem, cores


def _vmem_bytes(block_b, d):
    """Tightened lane-padded VMEM working-set estimate for one grid step."""
    lanes = lambda n: _round_up(n, _LANE)
    ld, l1, l2, l3 = lanes(d), lanes(_H1), lanes(_H2), lanes(_H3)
    x_tile = 2 * block_b * ld * 4                 # f32 x tile, double-buffered
    x_bf16 = block_b * ld * 2                     # in-kernel bf16 copy feeding the MXU
    # Peak live activations (not all layers at once): h1 f32 + h1 bf16 + h2 f32 (+ small h3).
    act = block_b * (l1 * 4 + l1 * 2 + l2 * 4 + l3 * 4)
    out = 2 * block_b * _LANE * 4                 # (block_b, 1) block, lane-padded, double-buffered
    w = 2 * (_round_up(d, _SUBLANE) * l1 * 2      # W1 bf16 (resident)
             + _round_up(_H1, _SUBLANE) * l2 * 2  # W2 bf16
             + _round_up(_H2, _SUBLANE) * l3 * 2  # W3 bf16
             + 8 * _LANE * 4)                     # packed consts f32
    return x_tile + x_bf16 + act + out + w


def _pick_block_b(batch, d, workset_cap, cores):
    """Batch tile: multiple of 16, up to 8192, VMEM-capped, even grid on v7x."""
    b_al = _round_up(max(batch, 1), _SUBLANE)
    block_b = min(_MAX_BLOCK_B, b_al)
    while block_b > _SUBLANE and _vmem_bytes(block_b, d) > workset_cap:
        block_b = max(_SUBLANE, _round_up(block_b // 2, _SUBLANE))
    # v7x (2 TCs): want an even, >= 2 step "parallel" grid so the batch axis
    # shards across both TensorCores.  On single-TC chips the grid is a serial
    # loop, so splitting a tile that already fits only adds per-step overhead.
    if cores > 1 and b_al >= 2 * _SUBLANE:
        steps = pl.cdiv(batch, block_b)
        if steps < 2 or steps % 2:
            target = max(2, steps + (steps % 2))
            cand = _round_up(pl.cdiv(b_al, target), _SUBLANE)
            if pl.cdiv(batch, cand) >= 2:
                block_b = cand
    return int(block_b)


def _deep_mlp_kernel(x_ref, w1_ref, w2_ref, w3_ref, c_ref, o_ref):
    h1 = w1_ref.shape[1]
    h2 = w2_ref.shape[1]
    h3 = w3_ref.shape[1]

    # Packed constants: row0=b1, row1=b2, row2=b3, row3=w4(as row), row4[0]=b4.
    b1 = c_ref[0:1, :h1]
    b2 = c_ref[1:2, :h2]
    b3 = c_ref[2:3, :h3]
    w4 = c_ref[3:4, :h3]
    b4 = c_ref[4:5, 0:1]

    # Layer 1: cast the f32 x tile to bf16 *in-kernel* (no wrapper pre-pass
    # over x), bf16 MXU matmul, f32 accumulate, f32 bias + ReLU.
    xb = x_ref[...].astype(jnp.bfloat16)
    h = jnp.dot(xb, w1_ref[...], preferred_element_type=jnp.float32)
    h = jnp.maximum(h + b1, 0.0)

    # Layers 2-3: bias-add/ReLU in f32 (v5e has no bf16 VPU); cast to bf16
    # only on the value feeding the next MXU matmul.
    h = jnp.dot(h.astype(jnp.bfloat16), w2_ref[...],
                preferred_element_type=jnp.float32)
    h = jnp.maximum(h + b2, 0.0)
    h = jnp.dot(h.astype(jnp.bfloat16), w3_ref[...],
                preferred_element_type=jnp.float32)
    h = jnp.maximum(h + b3, 0.0)

    # Layer 4 (out_features == 1): an N=1 MXU matmul wastes 127/128+ of the
    # systolic array; VPU multiply + XLU lane reduction instead (f32, tiny).
    out = jnp.sum(h * w4, axis=-1, keepdims=True) + b4

    # NOTE: the (block_b, 1) column store is lane-sparse, but output bytes are
    # <1% of input bytes; keep it unless a bundle dump shows the store slot
    # saturating.
    o_ref[...] = jax.nn.sigmoid(out).astype(o_ref.dtype)


def deep_mlp(x, w1, b1, w2, b2, w3, b3, w4, b4, *, block_b=None):
    """Fused DeepMLP forward as a single Pallas TPU kernel.

    x  : [B, D] f32
    w1 : [D, 128], w2 : [128, 64], w3 : [64, 32], w4 : [32, 1]
    b1 : [*, 128], b2 : [*, 64],  b3 : [*, 32],  b4 : [*, 1]
    returns [B, 1] f32

    Precision note (documented choice): x/W1/W2/W3 and the activations feeding
    each MXU matmul are bf16; accumulation, bias/ReLU and the final layer are
    f32.  This differs slightly from a pure-f32 PyTorch forward.
    """
    B, D = x.shape
    H1, H2, H3 = w1.shape[1], w2.shape[1], w3.shape[1]
    if max(H1, H2, H3) > _LANE:
        raise ValueError("packed-constant layout assumes hidden widths <= 128")

    vmem_cap, cores = _tpu_budget()
    workset_cap = max(24 << 20, vmem_cap - (24 << 20))      # ~40 MiB v7x, ~104 MiB v5e/v6e
    vmem_limit = max(32 << 20, min(vmem_cap - (16 << 20), 112 << 20))

    if block_b is None:
        block_b = _pick_block_b(B, D, workset_cap, cores)
    if block_b % 8 != 0:
        raise ValueError(f"block_b must be a multiple of 8, got {block_b}")

    # Tiny one-time bf16 casts of the *resident* weights (a few hundred KB at
    # most) -- not the wrapper-cast anti-pattern; x itself stays f32.
    w1_bf = w1.astype(jnp.bfloat16)
    w2_bf = w2.astype(jnp.bfloat16)
    w3_bf = w3.astype(jnp.bfloat16)

    # Pack the five tiny constants into one lane-padded (8, 128) f32 operand.
    consts = jnp.zeros((8, _LANE), jnp.float32)
    consts = consts.at[0, :H1].set(jnp.reshape(b1, (H1,)).astype(jnp.float32))
    consts = consts.at[1, :H2].set(jnp.reshape(b2, (H2,)).astype(jnp.float32))
    consts = consts.at[2, :H3].set(jnp.reshape(b3, (H3,)).astype(jnp.float32))
    consts = consts.at[3, :H3].set(jnp.reshape(w4, (H3,)).astype(jnp.float32))
    consts = consts.at[4, 0].set(jnp.reshape(b4, ()).astype(jnp.float32))

    grid = (pl.cdiv(B, block_b),)   # no jnp.pad: partial last tile is masked

    out = pl.pallas_call(
        _deep_mlp_kernel,
        out_shape=jax.ShapeDtypeStruct((B, 1), jnp.float32),
        grid_spec=pltpu.PrefetchScalarGridSpec(
            num_scalar_prefetch=0,
            grid=grid,
            in_specs=[
                pl.BlockSpec((block_b, D), lambda i: (i, 0)),   # x tile (f32)
                pl.BlockSpec((D, H1),      lambda i: (0, 0)),   # W1 (bf16, resident)
                pl.BlockSpec((H1, H2),     lambda i: (0, 0)),   # W2 (bf16)
                pl.BlockSpec((H2, H3),     lambda i: (0, 0)),   # W3 (bf16)
                pl.BlockSpec((8, _LANE),   lambda i: (0, 0)),   # packed b1,b2,b3,w4,b4
            ],
            out_specs=pl.BlockSpec((block_b, 1), lambda i: (i, 0)),
        ),
        compiler_params=pltpu.CompilerParams(
            dimension_semantics=("parallel",),
            vmem_limit_bytes=int(vmem_limit)),
    )(x.astype(jnp.float32), w1_bf, w2_bf, w3_bf, consts)

    return out


def _reference(x, w1, b1, w2, b2, w3, b3, w4, b4, *, mimic_bf16=True):
    hi = jax.lax.Precision.HIGHEST
    bf = (lambda a: a.astype(jnp.bfloat16).astype(jnp.float32)) if mimic_bf16 \
        else (lambda a: a)
    h = jnp.maximum(jnp.dot(bf(x), bf(w1), precision=hi) + b1, 0.0)
    h = jnp.maximum(jnp.dot(bf(h), bf(w2), precision=hi) + b2, 0.0)
    h = jnp.maximum(jnp.dot(bf(h), bf(w3), precision=hi) + b3, 0.0)
    return jax.nn.sigmoid(jnp.dot(h, w4, precision=hi) + b4)


if __name__ == "__main__":
    key = jax.random.PRNGKey(0)
    ks = jax.random.split(key, 9)

    B = 8
    INPUT_DIM = 32          # stand-in for X_train.shape[1]

    x = jax.random.normal(ks[0], (B, INPUT_DIM), dtype=jnp.float32)

    def _init(kw, kb, fan_in, fan_out):
        bound = 1.0 / (fan_in ** 0.5)
        w = jax.random.uniform(kw, (fan_in, fan_out), jnp.float32, -bound, bound)
        b = jax.random.uniform(kb, (1, fan_out), jnp.float32, -bound, bound)
        return w, b

    w1, b1 = _init(ks[1], ks[2], INPUT_DIM, _H1)
    w2, b2 = _init(ks[3], ks[4], _H1, _H2)
    w3, b3 = _init(ks[5], ks[6], _H2, _H3)
    w4, b4 = _init(ks[7], ks[8], _H3, 1)

    out = deep_mlp(x, w1, b1, w2, b2, w3, b3, w4, b4)
    out = jax.block_until_ready(out)

    # Reference that mimics the kernel's documented bf16-on-MXU precision.
    ref = _reference(x, w1, b1, w2, b2, w3, b3, w4, b4, mimic_bf16=True)
    # Pure-f32 reference (sanity check on the precision choice, looser tol).
    ref_f32 = _reference(x, w1, b1, w2, b2, w3, b3, w4, b4, mimic_bf16=False)

    assert out.shape == (B, 1)
    assert jnp.allclose(out, ref, atol=2e-3, rtol=2e-3), (
        f"max abs err vs bf16-mimic ref {float(jnp.max(jnp.abs(out - ref)))}")
    assert jnp.allclose(out, ref_f32, atol=5e-2, rtol=5e-2), (
        f"max abs err vs f32 ref {float(jnp.max(jnp.abs(out - ref_f32)))}")

    # TODO(synk): the sklearn StandardScaler / training loop in the source file
    # are preprocessing/optimization, not part of the module forward pass.
    print("KERNEL_OK")
</pallas_src>

<mosaic_0001>
module attributes {stable_mosaic.version = 11 : i64} {
  func.func @_deep_mlp_kernel(%arg0: i32, %arg1: memref<16x32xf32, #tpu.memory_space<vmem>>, %arg2: memref<32x128xbf16, #tpu.memory_space<vmem>>, %arg3: memref<128x64xbf16, #tpu.memory_space<vmem>>, %arg4: memref<64x32xbf16, #tpu.memory_space<vmem>>, %arg5: memref<8x128xf32, #tpu.memory_space<vmem>>, %arg6: memref<16x1xf32, #tpu.memory_space<vmem>>) attributes {dimension_semantics = [#tpu.dimension_semantics<parallel>], iteration_bounds = array<i64: 1>, scalar_prefetch = 0 : i64, scratch_operands = 0 : i64, tpu.core_type = #tpu.core_type<tc>, window_params = [{transform_indices = @transform_0, window_bounds = array<i64: 16, 32>}, {pipeline_mode = #tpu.pipeline_mode<synchronous>, transform_indices = @transform_1, window_bounds = array<i64: 32, 128>}, {pipeline_mode = #tpu.pipeline_mode<synchronous>, transform_indices = @transform_2, window_bounds = array<i64: 128, 64>}, {pipeline_mode = #tpu.pipeline_mode<synchronous>, transform_indices = @transform_3, window_bounds = array<i64: 64, 32>}, {pipeline_mode = #tpu.pipeline_mode<synchronous>, transform_indices = @transform_4, window_bounds = array<i64: 8, 128>}, {transform_indices = @transform_5, window_bounds = array<i64: 16, 1>}]} {
    %c0 = arith.constant 0 : index
    %c0_0 = arith.constant 0 : index
    %0 = vector.load %arg5[%c0, %c0_0] : memref<8x128xf32, #tpu.memory_space<vmem>>, vector<1x128xf32>
    %c1 = arith.constant 1 : index
    %c0_1 = arith.constant 0 : index
    %1 = vector.load %arg5[%c1, %c0_1] : memref<8x128xf32, #tpu.memory_space<vmem>>, vector<1x64xf32>
    %c2 = arith.constant 2 : index
    %c0_2 = arith.constant 0 : index
    %2 = vector.load %arg5[%c2, %c0_2] : memref<8x128xf32, #tpu.memory_space<vmem>>, vector<1x32xf32>
    %c3 = arith.constant 3 : index
    %c0_3 = arith.constant 0 : index
    %3 = vector.load %arg5[%c3, %c0_3] : memref<8x128xf32, #tpu.memory_space<vmem>>, vector<1x32xf32>
    %c4 = arith.constant 4 : index
    %c0_4 = arith.constant 0 : index
    %4 = vector.load %arg5[%c4, %c0_4] : memref<8x128xf32, #tpu.memory_space<vmem>>, vector<1x1xf32>
    %c0_5 = arith.constant 0 : index
    %c0_6 = arith.constant 0 : index
    %5 = vector.load %arg1[%c0_5, %c0_6] : memref<16x32xf32, #tpu.memory_space<vmem>>, vector<16x32xf32>
    %6 = arith.truncf %5 : vector<16x32xf32> to vector<16x32xbf16>
    %c0_7 = arith.constant 0 : index
    %c0_8 = arith.constant 0 : index
    %7 = vector.load %arg2[%c0_7, %c0_8] : memref<32x128xbf16, #tpu.memory_space<vmem>>, vector<32x128xbf16>
    %cst = arith.constant dense<0.000000e+00> : vector<16x128xf32>
    %8 = tpu.matmul %6, %7, %cst {dimension_numbers = #tpu.dot_dimension_numbers<[1], [0], [0], [1], [0, 0, 1, 1], [], []>} : vector<16x32xbf16>, vector<32x128xbf16>, vector<16x128xf32> -> vector<16x128xf32>
    %9 = vector.broadcast %0 : vector<1x128xf32> to vector<16x128xf32>
    %10 = arith.addf %8, %9 : vector<16x128xf32>
    %cst_9 = arith.constant 0.000000e+00 : f32
    %11 = vector.broadcast %cst_9 : f32 to vector<16x128xf32>
    %12 = arith.maximumf %10, %11 : vector<16x128xf32>
    %13 = arith.truncf %12 : vector<16x128xf32> to vector<16x128xbf16>
    %c0_10 = arith.constant 0 : index
    %c0_11 = arith.constant 0 : index
    %14 = vector.load %arg3[%c0_10, %c0_11] : memref<128x64xbf16, #tpu.memory_space<vmem>>, vector<128x64xbf16>
    %cst_12 = arith.constant dense<0.000000e+00> : vector<16x64xf32>
    %15 = tpu.matmul %13, %14, %cst_12 {dimension_numbers = #tpu.dot_dimension_numbers<[1], [0], [0], [1], [0, 0, 1, 1], [], []>} : vector<16x128xbf16>, vector<128x64xbf16>, vector<16x64xf32> -> vector<16x64xf32>
    %16 = vector.broadcast %1 : vector<1x64xf32> to vector<16x64xf32>
    %17 = arith.addf %15, %16 : vector<16x64xf32>
    %cst_13 = arith.constant 0.000000e+00 : f32
    %18 = vector.broadcast %cst_13 : f32 to vector<16x64xf32>
    %19 = arith.maximumf %17, %18 : vector<16x64xf32>
    %20 = arith.truncf %19 : vector<16x64xf32> to vector<16x64xbf16>
    %c0_14 = arith.constant 0 : index
    %c0_15 = arith.constant 0 : index
    %21 = vector.load %arg4[%c0_14, %c0_15] : memref<64x32xbf16, #tpu.memory_space<vmem>>, vector<64x32xbf16>
    %cst_16 = arith.constant dense<0.000000e+00> : vector<16x32xf32>
    %22 = tpu.matmul %20, %21, %cst_16 {dimension_numbers = #tpu.dot_dimension_numbers<[1], [0], [0], [1], [0, 0, 1, 1], [], []>} : vector<16x64xbf16>, vector<64x32xbf16>, vector<16x32xf32> -> vector<16x32xf32>
    %23 = vector.broadcast %2 : vector<1x32xf32> to vector<16x32xf32>
    %24 = arith.addf %22, %23 : vector<16x32xf32>
    %cst_17 = arith.constant 0.000000e+00 : f32
    %25 = vector.broadcast %cst_17 : f32 to vector<16x32xf32>
    %26 = arith.maximumf %24, %25 : vector<16x32xf32>
    %27 = vector.broadcast %3 : vector<1x32xf32> to vector<16x32xf32>
    %28 = arith.mulf %26, %27 : vector<16x32xf32>
    %cst_18 = arith.constant dense<0.000000e+00> : vector<16xf32>
    %29 = vector.multi_reduction <add>, %28, %cst_18 [1] : vector<16x32xf32> to vector<16xf32>
    %30 = vector.shape_cast %29 : vector<16xf32> to vector<16x1xf32>
    %31 = vector.broadcast %4 : vector<1x1xf32> to vector<16x1xf32>
    %32 = arith.addf %30, %31 : vector<16x1xf32>
    %33 = arith.negf %32 : vector<16x1xf32>
    %34 = math.exp %33 : vector<16x1xf32>
    %cst_19 = arith.constant 1.000000e+00 : f32
    %35 = vector.broadcast %cst_19 : f32 to vector<16x1xf32>
    %36 = arith.addf %35, %34 : vector<16x1xf32>
    %37 = arith.divf %35, %36 : vector<16x1xf32>
    %c0_20 = arith.constant 0 : index
    %c0_21 = arith.constant 0 : index
    %38 = vector.load %arg6[%c0_20, %c0_21] : memref<16x1xf32, #tpu.memory_space<vmem>>, vector<16x1xf32>
    tpu.vector_store %arg6[%c0_20, %c0_21], %37 {strides = array<i32>} : memref<16x1xf32, #tpu.memory_space<vmem>>, vector<16x1xf32>,
    return
  }
  func.func @transform_0(%arg0: i32) -> (i32, i32) {
    %c0_i32 = arith.constant 0 : i32
    %c0_i32_0 = arith.constant 0 : i32
    return %arg0, %c0_i32 : i32, i32
  }
  func.func @transform_1(%arg0: i32) -> (i32, i32) {
    %c0_i32 = arith.constant 0 : i32
    %c0_i32_0 = arith.constant 0 : i32
    %c0_i32_1 = arith.constant 0 : i32
    return %c0_i32, %c0_i32_0 : i32, i32
  }
  func.func @transform_2(%arg0: i32) -> (i32, i32) {
    %c0_i32 = arith.constant 0 : i32
    %c0_i32_0 = arith.constant 0 : i32
    %c0_i32_1 = arith.constant 0 : i32
    return %c0_i32, %c0_i32_0 : i32, i32
  }
  func.func @transform_3(%arg0: i32) -> (i32, i32) {
    %c0_i32 = arith.constant 0 : i32
    %c0_i32_0 = arith.constant 0 : i32
    %c0_i32_1 = arith.constant 0 : i32
    return %c0_i32, %c0_i32_0 : i32, i32
  }
  func.func @transform_4(%arg0: i32) -> (i32, i32) {
    %c0_i32 = arith.constant 0 : i32
    %c0_i32_0 = arith.constant 0 : i32
    %c0_i32_1 = arith.constant 0 : i32
    return %c0_i32, %c0_i32_0 : i32, i32
  }
  func.func @transform_5(%arg0: i32) -> (i32, i32) {
    %c0_i32 = arith.constant 0 : i32
    %c0_i32_0 = arith.constant 0 : i32
    return %arg0, %c0_i32 : i32, i32
  }
}

</mosaic_0001>

<bundles_post_ra>
// kernel: tpu_custom_call.1
= control target key start
LH: loop header
LB: loop body
LE: loop exit
PB: predicated region body
PF: predicated region fallthrough
CT: control target
= control target key end

     0   :  { %10 = vsyncpa [#allocation3], 0  ;;  %s800_s0 = inlined_call_operand.hbm [shape: f32[8,32], index: 0, kind: input, shape index: {}]   ;;  %s801_s1 = inlined_call_operand.hbm [shape: bf16[32,128], index: 1, kind: input, shape index: {}]   ;;  %s802_s2 = inlined_call_operand.hbm [shape: bf16[128,64], index: 2, kind: input, shape index: {}]   ;;  %s803_s3 = inlined_call_operand.hbm [shape: bf16[64,32], index: 3, kind: input, shape index: {}]   ;;  %s804_s4 = inlined_call_operand.hbm [shape: f32[8,128], index: 4, kind: input, shape index: {}]   ;;  %s805_s5 = inlined_call_operand.hbm [shape: f32[8,1], index: 5, kind: output, shape index: {}]  }
   0x1   :  { %11 = vsyncpa [#allocation6], 0 }
   0x2   :  { %12 = vsyncpa [#allocation9], 0 }
   0x3   :  { %13 = vsyncpa [#allocation4], 0 }
   0x4   :  { %18 = vsyncadd [#allocation3], 128  ;;  %s665_s18 = smov [#allocation5]   ;;  %s525_s22 = scalar_lea.hbm %s801_s1, 256 }
   0x5   :  { %s31_s19 = sshll.u32 %s665_s18, 4  ;;  %p526_p0 = scmp.ne.s32.totalorder %s801_s1, %s525_s22  ;;  %s32_s19 = int_to_ptr.vmem [resolvable:$true] %s31_s19 }
   0x6   :  { %p529_p1 = scmp.lt.u32.totalorder %s525_s22, %s801_s1 }
   0x8   :  { %p531_p2 = pnand %p529_p1, %p526_p0 }
   0xa   :  { %534 = shalt.err (!%p531_p2)
}
   0xb   :  { %s535_s27 = scalar_lea.vmem %s32_s19, 256  ;;  %p540_p4 = scmp.lt.s32.totalorder %s32_s19, %s32_s19 }
   0xc   :  { %p536_p3 = scmp.ne.s32.totalorder %s32_s19, %s535_s27  ;;  %p541_p5 = scmp.lt.s32.totalorder %s535_s27, %s535_s27 }
   0xe   :  { %p542_p6 = por %p541_p5, %p540_p4 }
  0x10   :  { %p543_p7 = pnand %p542_p6, %p536_p3 }
  0x12   :  { %546 = shalt.err (!%p543_p7)
}
  0x13   :  { %s666_s28 = smov 64   ;;  %s667_s29 = smov 4  }
  0x14   :  { %37 = dma.hbm_to_vmem [thread:$0]  %s801_s1, 256, %s32_s19, [#allocation6], %s666_s28, %s666_s28, %s667_s29  }
  0x15   :  { %s668_s7 = smov [#allocation8]   ;;  %s669_s9 = smov [#allocation2]  }
  0x16   :  { %s55_s8 = sshll.u32 %s668_s7, 4  ;;  %s19_s10 = sshll.u32 %s669_s9, 4  ;;  %s56_s8 = int_to_ptr.vmem [resolvable:$true] %s55_s8  ;;  %s20_s10 = int_to_ptr.vmem [resolvable:$true] %s19_s10 }
  0x17   :  { %s547_s13 = scalar_lea.hbm %s803_s3, 512 }
  0x18   :  { %p548_p8 = scmp.ne.s32.totalorder %s803_s3, %s547_s13  ;;  %p551_p9 = scmp.lt.u32.totalorder %s547_s13, %s803_s3 }
  0x1a   :  { %p553_p10 = pnand %p551_p9, %p548_p8 }
  0x1c   :  { %556 = shalt.err (!%p553_p10)
}
  0x1d   :  { %s557_s1 = scalar_lea.vmem %s56_s8, 512  ;;  %p562_p12 = scmp.lt.s32.totalorder %s56_s8, %s56_s8 }
  0x1e   :  { %p558_p11 = scmp.ne.s32.totalorder %s56_s8, %s557_s1  ;;  %p563_p13 = scmp.lt.s32.totalorder %s557_s1, %s557_s1 }
  0x20   :  { %p564_p0 = por %p563_p13, %p562_p12 }
  0x22   :  { %p565_p1 = pnand %p564_p0, %p558_p11 }
  0x24   :  { %568 = shalt.err (!%p565_p1)
}
  0x25   :  { %61 = dma.hbm_to_vmem [thread:$0]  %s803_s3, 512, %s56_s8, [#allocation9], %s666_s28, %s666_s28, %s667_s29  }
  0x26   :  { %s569_s22 = scalar_lea.hbm %s800_s0, 128 }
  0x27   :  { %p570_p2 = scmp.ne.s32.totalorder %s800_s0, %s569_s22  ;;  %p573_p3 = scmp.lt.u32.totalorder %s569_s22, %s800_s0 }
  0x29   :  { %p575_p4 = pnand %p573_p3, %p570_p2 }
  0x2b   :  { %578 = shalt.err (!%p575_p4)
}
  0x2c   :  { %s579_s27 = scalar_lea.vmem %s20_s10, 128  ;;  %s583_s30 = scalar_lea.vmem %s20_s10, 256 }
  0x2d   :  { %p580_p5 = scmp.ne.s32.totalorder %s20_s10, %s579_s27  ;;  %p584_p6 = scmp.lt.s32.totalorder %s20_s10, %s20_s10 }
  0x2e   :  { %p585_p7 = scmp.lt.s32.totalorder %s583_s30, %s579_s27 }
  0x30   :  { %p586_p8 = por %p585_p7, %p584_p6 }
  0x32   :  { %p587_p9 = pnand %p586_p8, %p580_p5 }
  0x34   :  { %590 = shalt.err (!%p587_p9)
}
  0x35   :  { %s670_s3 = smov 128   ;;  %s671_s6 = smov 8  }
  0x36   :  { %25 = dma.hbm_to_vmem [thread:$0]  %s800_s0, 128, %s20_s10, [#allocation3], %s670_s3, %s670_s3, %s671_s6  }
  0x37   :  { %s672_s9 = smov [#allocation7]   ;;  %s673_s12 = smov [#allocation10]  }
  0x38   :  { %s43_s11 = sshll.u32 %s672_s9, 4  ;;  %s68_s13 = sshll.u32 %s673_s12, 4  ;;  %s44_s11 = int_to_ptr.vmem [resolvable:$true] %s43_s11  ;;  %s69_s13 = int_to_ptr.vmem [resolvable:$true] %s68_s13 }
  0x39   :  { %s591_s16 = scalar_lea.hbm %s802_s2, 1024 }
  0x3a   :  { %p592_p10 = scmp.ne.s32.totalorder %s802_s2, %s591_s16  ;;  %p595_p11 = scmp.lt.u32.totalorder %s591_s16, %s802_s2 }
  0x3c   :  { %p597_p12 = pnand %p595_p11, %p592_p10 }
  0x3e   :  { %600 = shalt.err (!%p597_p12)
}
  0x3f   :  { %s601_s0 = scalar_lea.vmem %s44_s11, 1024  ;;  %p606_p0 = scmp.lt.s32.totalorder %s44_s11, %s44_s11 }
  0x40   :  { %p602_p13 = scmp.ne.s32.totalorder %s44_s11, %s601_s0  ;;  %p607_p1 = scmp.lt.s32.totalorder %s601_s0, %s601_s0 }
  0x42   :  { %p608_p2 = por %p607_p1, %p606_p0 }
  0x44   :  { %p609_p3 = pnand %p608_p2, %p602_p13 }
  0x46   :  { %612 = shalt.err (!%p609_p3)
}
  0x47   :  { %49 = dma.hbm_to_vmem [thread:$0]  %s802_s2, 1024, %s44_s11, [#allocation6], %s666_s28, %s666_s28, %s667_s29  }
  0x48   :  { %s613_s23 = scalar_lea.hbm %s804_s4, 128 }
  0x49   :  { %p614_p4 = scmp.ne.s32.totalorder %s804_s4, %s613_s23  ;;  %p617_p5 = scmp.lt.u32.totalorder %s613_s23, %s804_s4 }
  0x4b   :  { %p619_p6 = pnand %p617_p5, %p614_p4 }
  0x4d   :  { %622 = shalt.err (!%p619_p6)
}
  0x4e   :  { %s623_s30 = scalar_lea.vmem %s69_s13, 128  ;;  %p628_p8 = scmp.lt.s32.totalorder %s69_s13, %s69_s13 }
  0x4f   :  { %p624_p7 = scmp.ne.s32.totalorder %s69_s13, %s623_s30  ;;  %p629_p9 = scmp.lt.s32.totalorder %s623_s30, %s623_s30 }
  0x51   :  { %p630_p10 = por %p629_p9, %p628_p8 }
  0x53   :  { %p631_p11 = pnand %p630_p10, %p624_p7 }
  0x55   :  { %634 = shalt.err (!%p631_p11)
}
  0x56   :  { %71 = dma.hbm_to_vmem [thread:$0]  %s804_s4, 128, %s69_s13, [#allocation9]  }
  0x57   :  { %657 = dma.done.wait [#allocation3], 256  }
  0x58   :  { %658 = vsyncadd [#allocation3], 4294967040 }
  0x59   :  { %659 = dma.done.wait [#allocation6], 1280  }
  0x5a   :  { %660 = vsyncadd [#allocation6], 4294966016 }
  0x5b   :  { %661 = dma.done.wait [#allocation9], 640  }
  0x5c   :  { %662 = vsyncadd [#allocation9], 4294966656  ;;  %v674_v0 = vmov 0.0   ;;  %vm675_vm0 = vmmov 0   ;;  %v503_v1 = vld [vmem:[#allocation5] sm:$0xff]   ;;  %v504_v2 = vld [vmem:[#allocation5 + $0x8] sm:$0xff]  }
  0x5d   :  { %451 = vmatprep.subr.bf16.mxu0 %v674_v0  ;;  %455 = vmatprep.mubr.msk.bf16.mxu0 %vm675_vm0, %v674_v0  ;;  %v93_v3 = vld [vmem:[#allocation2] sm:$0xff]  ;;  %v94_v4 = vld [vmem:[#allocation2 + $0x8] sm:$0xff]  ;;  %vm116_vm1 = vcmask 261120   ;;  %v507_v8 = vld [vmem:[#allocation7 + $0x10] sm:$0xff]   ;;  %vm312_vm2 = vcmask 523264   ;;  %vm389_vm3 = vcmask 7168  }
  0x5e   :  { %459 = vmatprep.subr.bf16.mxu1 %v674_v0  ;;  %475 = vmatprep.mubr.msk.bf16.mxu1 %vm675_vm0, %v674_v0  ;;  %v505_v5 = vld [vmem:[#allocation7] sm:$0xff]   ;;  %v95_v6 = vpack.c.bf16 %v94_v4, %v93_v3  ;;  %v506_v7 = vld [vmem:[#allocation7 + $0x8] sm:$0xff]   ;;  %v508_v9 = vld [vmem:[#allocation7 + $0x18] sm:$0xff]  }
  0x5f   :  { %452 = vmatpush3.bf16.msra.mxu0 %v503_v1  ;;  %460 = vmatpush3.bf16.msra.mxu1 %v505_v5  ;;  %v509_v10 = vld [vmem:[#allocation7 + $0x20] sm:$0xff]   ;;  %v510_v11 = vld [vmem:[#allocation7 + $0x28] sm:$0xff]   ;;  %v511_v12 = vld [vmem:[#allocation7 + $0x30] sm:$0xff]  }
  0x60   :  { %453 = vmatprep.subr.bf16.mxu0 %v674_v0  ;;  %461 = vmatprep.subr.bf16.mxu1 %v674_v0  ;;  %v512_v13 = vld [vmem:[#allocation7 + $0x38] sm:$0xff]   ;;  %v513_v14 = vld [vmem:[#allocation8] sm:$0xff]   ;;  %v514_v15 = vld [vmem:[#allocation8 + $0x8] sm:$0xff]  }
  0x61   :  { %v411_v16 = vld [vmem:[#allocation10] ss:$0 sm:$0xff]  ;;  %v515_v26 = vld [vmem:[#allocation8 + $0x10] sm:$0xff]   ;;  %v516_v27 = vld [vmem:[#allocation8 + $0x18] sm:$0xff]  }
  0x62   :  { %v415_v28 = vld [vmem:[#allocation10 + $0x1] ss:$0 sm:$0xff]  ;;  %v424_v38 = vld [vmem:[#allocation10 + $0x2] ss:$0 sm:$0xff]  ;;  %v430_v43 = vld [vmem:[#allocation10 + $0x3] ss:$0 sm:$0xff] }
  0x63   :  { %454 = vmatpush3.bf16.msra.mxu0 %v504_v2  ;;  %462 = vmatpush3.bf16.msra.mxu1 %v506_v7  ;;  %v431_v52 = vld [vmem:[#allocation10 + $0x4] ss:$0 sm:$0xff] }
  0x64   :  { %479 = vmatprep.subr.bf16.mxu0 %v674_v0  ;;  %463 = vmatprep.subr.bf16.mxu1 %v674_v0 }
  0x66   :  { %456 = vmatmul.mubr.msk.bf16.vlgmr.msra.gmra.mrb[0].mxu0 %vm116_vm1, %v95_v6 }
  0x67   :  { %487 = vmatprep.mubr.msk.bf16.mxu0 %vm675_vm0, %v674_v0  ;;  %464 = vmatpush3.bf16.msra.mxu1 %v507_v8 }
  0x68   :  { %465 = vmatprep.subr.bf16.mxu1 %v674_v0  ;;  %480 = vmatpush3.bf16.msra.mxu0 %v513_v14 }
  0x69   :  { %481 = vmatprep.subr.bf16.mxu0 %v674_v0 }
  0x6b   :  { %466 = vmatpush3.bf16.msra.mxu1 %v508_v9 }
  0x6c   :  { %467 = vmatprep.subr.bf16.mxu1 %v674_v0  ;;  %482 = vmatpush3.bf16.msra.mxu0 %v514_v15 }
  0x6d   :  { %483 = vmatprep.subr.bf16.mxu0 %v674_v0 }
  0x6f   :  { %468 = vmatpush3.bf16.msra.mxu1 %v509_v10 }
  0x70   :  { %469 = vmatprep.subr.bf16.mxu1 %v674_v0  ;;  %484 = vmatpush3.bf16.msra.mxu0 %v515_v26 }
  0x71   :  { %485 = vmatprep.subr.bf16.mxu0 %v674_v0 }
  0x73   :  { %470 = vmatpush3.bf16.msra.mxu1 %v510_v11 }
  0x74   :  { %471 = vmatprep.subr.bf16.mxu1 %v674_v0  ;;  %486 = vmatpush3.bf16.msra.mxu0 %v516_v27 }
  0x77   :  { %472 = vmatpush3.bf16.msra.mxu1 %v511_v12 }
  0x78   :  { %473 = vmatprep.subr.bf16.mxu1 %v674_v0 }
  0x7b   :  { %474 = vmatpush3.bf16.msra.mxu1 %v512_v13 }
 0x139   :  { %v154_v17 = vpop.f32.mrb[0].mxu0 }
 0x13a   :  { %v155_v18 = vadd.f32 %v411_v16, %v154_v17  ;;  %v457_v19 = vpop.f32.mrb[1].mxu0 }
 0x13b   :  { %v157_v20 = vpop.f32.mrb[2].mxu0 }
 0x13c   :  { %v158_v21 = vadd.f32 %v411_v16, %v157_v20  ;;  %v458_v22 = vpop.f32.mrb[3].mxu0  ;;  %v161_v23 = vmax.f32 %v155_v18, 0.0 }
 0x13e   :  { %v162_v24 = vmax.f32 %v158_v21, 0.0 }
 0x140   :  { %v163_v25 = vpack.c.bf16 %v162_v24, %v161_v23 }
 0x142   :  { %476 = vmatmul.mubr.bf16.vlgmr.msra.gmra.mrb[0].mxu1 %v163_v25 }
 0x215   :  { %v266_v29 = vpop.f32.mrb[0].mxu1 }
 0x216   :  { %v267_v30 = vadd.f32 %v415_v28, %v266_v29  ;;  %v477_v31 = vpop.f32.mrb[1].mxu1 }
 0x217   :  { %v269_v32 = vpop.f32.mrb[2].mxu1 }
 0x218   :  { %v270_v33 = vadd.f32 %v415_v28, %v269_v32  ;;  %v478_v34 = vpop.f32.mrb[3].mxu1  ;;  %v273_v35 = vmax.f32 %v267_v30, 0.0 }
 0x21a   :  { %v274_v36 = vmax.f32 %v270_v33, 0.0 }
 0x21c   :  { %v275_v37 = vpack.c.bf16 %v274_v36, %v273_v35 }
 0x21e   :  { %488 = vmatmul.mubr.msk.bf16.vlgmr.msra.gmra.mrb[4].mxu0 %vm312_vm2, %v275_v37 }
 0x2f1   :  { %v350_v39 = vpop.f32.mrb[4].mxu0 }
 0x2f2   :  { %v351_v40 = vadd.f32 %v424_v38, %v350_v39  ;;  %v489_v41 = vpop.f32.mrb[5].mxu0 }
 0x2f3   :  { %v353_v42 = vpop.f32.mrb[6].mxu0 }
 0x2f4   :  { %v357_v44 = vmax.f32 %v351_v40, 0.0  ;;  %v354_v45 = vadd.f32 %v424_v38, %v353_v42  ;;  %v490_v46 = vpop.f32.mrb[7].mxu0 }
 0x2f6   :  { %v358_v47 = vmax.f32 %v354_v45, 0.0  ;;  %v363_v48 = vmul.f32 %v430_v43, %v357_v44 }
 0x2f8   :  { %v365_v49 = vsel %vm116_vm1, %v363_v48, 0.0  ;;  %v364_v50 = vmul.f32 %v430_v43, %v358_v47 }
 0x2f9   :  { %366 = vadd.xlane.f32.xlu0 %v365_v49 }
 0x2fa   :  { %v368_v51 = vsel %vm116_vm1, %v364_v50, 0.0 }
 0x2fd   :  { %369 = vadd.xlane.f32.xlu0 %v368_v51 }
 0x386   :  { %v367_v53 = vpop.xlane.xlu0 %366 }
 0x387   :  { %v375_v54 = vadd.f32 %v431_v52, %v367_v53 }
 0x389   :  { %v432_v55 = vmul.f32 -1.442695, %v375_v54 }
 0x38a   :  { %v370_v56 = vpop.xlane.xlu0 %369 }
 0x38b   :  { %517 = vpow2.f32 %v432_v55  ;;  %v376_v57 = vadd.f32 %v431_v52, %v370_v56 }
 0x38d   :  { %v433_v58 = vmul.f32 -1.442695, %v376_v57 }
 0x38f   :  { %519 = vpow2.f32 %v433_v58 }
 0x395   :  { %v518_v59 = vpop.eup %517 }
 0x396   :  { %v383_v60 = vadd.f32 1.0, %v518_v59 }
 0x398   :  { %521 = vrcp.f32 %v383_v60 }
 0x399   :  { %v520_v61 = vpop.eup %519 }
 0x39a   :  { %v384_v62 = vadd.f32 1.0, %v520_v61 }
 0x39c   :  { %523 = vrcp.f32 %v384_v62 }
 0x3a2   :  { %v522_v63 = vpop.eup %521 }
 0x3a3   :  { %390 = vst.msk [vmem:[#allocation11] sm:$0xff] %vm389_vm3, %v522_v63 }
 0x3a6   :  { %v524_v0 = vpop.eup %523 }
 0x3a7   :  { %391 = vst.msk [vmem:[#allocation11 + $0x8] sm:$0xff] %vm389_vm3, %v524_v0 }
 0x3a8   :  { %396 = vsyncadd [#allocation4], 128  ;;  %s676_s4 = smov [#allocation11]  }
 0x3a9   :  { %s397_s29 = sshll.u32 %s676_s4, 4  ;;  %s398_s29 = int_to_ptr.vmem [resolvable:$true] %s397_s29 }
 0x3aa   :  { %s635_s7 = scalar_lea.vmem %s398_s29, 128  ;;  %s639_s8 = scalar_lea.vmem %s398_s29, 256 }
 0x3ab   :  { %p636_p12 = scmp.ne.s32.totalorder %s398_s29, %s635_s7  ;;  %p640_p13 = scmp.lt.s32.totalorder %s398_s29, %s398_s29 }
 0x3ac   :  { %p641_p0 = scmp.lt.s32.totalorder %s639_s8, %s635_s7 }
 0x3ae   :  { %p642_p1 = por %p641_p0, %p640_p13 }
 0x3b0   :  { %p643_p2 = pnand %p642_p1, %p636_p12 }
 0x3b2   :  { %646 = shalt.err (!%p643_p2)
}
 0x3b3   :  { %s647_s12 = scalar_lea.hbm %s805_s5, 128 }
 0x3b4   :  { %p648_p3 = scmp.ne.s32.totalorder %s805_s5, %s647_s12  ;;  %p651_p4 = scmp.lt.u32.totalorder %s647_s12, %s805_s5 }
 0x3b6   :  { %p653_p5 = pnand %p651_p4, %p648_p3 }
 0x3b8   :  { %656 = shalt.err (!%p653_p5)
}
 0x3b9   :  { %403 = dma.vmem_to_hbm [thread:$0]  %s398_s29, 128, %s805_s5, [#allocation4], %s670_s3, %s670_s3, %s671_s6  }
 0x3ba   :  { %663 = dma.done.wait [#allocation4], 256  }
 0x3bb   :  { %664 = vsyncadd [#allocation4], 4294967040 }
 0x3bc   :  { %407 = vsyncpa [#allocation3], 1 }
 0x3bd   :  { %408 = vsyncpa [#allocation6], 1 }
 0x3be   :  { %409 = vsyncpa [#allocation9], 1 }
 0x3bf   :  { %410 = vsyncpa [#allocation4], 1 }

</bundles_post_ra>
